<compile_context>
chip_gen: v7x
topology: tpu7x:2x2x1
jax: 0.10.0
libtpu: 0.0.40
codegen_flags: <defaults>
</compile_context>

<pallas_src>
import functools
import math

import jax
import jax.numpy as jnp
import numpy as np
from jax.experimental import pallas as pl
from jax.experimental.pallas import tpu as pltpu


def _const_spec(block_shape, index_map):
    """BlockSpec for grid-constant operands (weights/biases): single-buffered.

    These blocks never change across the grid, so double-buffering them just
    duplicates them in VMEM with zero DMA benefit.
    """
    try:
        return pl.BlockSpec(block_shape, index_map, pipeline_mode=pl.Buffered(1))
    except TypeError:   # older JAX without pipeline_mode: still correct, just 2x VMEM
        return pl.BlockSpec(block_shape, index_map)


# ----------------------- Kernel 1: LN + modulate + QKV -----------------------
def qkv_kernel(x_ref, shift_ref, scale1p_ref, w_qkv_ref, b_qkv_ref, qkv_ref):
    x = x_ref[0]                                        # (tq, D) f32
    mean = jnp.mean(x, axis=-1, keepdims=True)
    var = jnp.mean((x - mean) ** 2, axis=-1, keepdims=True)
    xn = (x - mean) * jax.lax.rsqrt(var + 1e-6)         # LayerNorm, eps=1e-6, no affine
    xm = xn * scale1p_ref[0] + shift_ref[0]             # adaLN modulate (1+scale hoisted)
    qkv = jnp.dot(xm.astype(jnp.bfloat16), w_qkv_ref[...],
                  preferred_element_type=jnp.float32) + b_qkv_ref[...]
    qkv_ref[0] = qkv.astype(qkv_ref.dtype)              # lane-dense (tq, 3D) bf16 store


# ------------- Kernel 2: attention + proj + residual + MLP + residual --------
def attn_mlp_kernel(x_ref, q_ref, k_ref, v_ref,
                    gate_msa_ref, shift_mlp_ref, scale1p_mlp_ref, gate_mlp_ref,
                    w_projh_ref, b_proj_ref,
                    w_fc1_ref, b_fc1_ref, w_fc2_ref, b_fc2_ref,
                    out_ref, *, num_heads, sm_scale):
    x = x_ref[0]                                        # (tq, D)      f32
    q = q_ref[0]                                        # (H, tq, Dhp) bf16
    k = k_ref[0]                                        # (H, N,  Dhp) bf16
    v = v_ref[0]                                        # (H, N,  Dhp) bf16

    # ---- head-batched attention; softmax normalized AFTER the PV matmul ----
    s = jnp.einsum('hqd,hkd->hqk', q, k,
                   preferred_element_type=jnp.float32) * sm_scale     # (H, tq, N) f32
    s = s - jnp.max(s, axis=-1, keepdims=True)
    p = jnp.exp(s)                                                    # f32
    l = jnp.sum(p, axis=-1, keepdims=True)                            # (H, tq, 1) f32
    o = jnp.einsum('hqk,hkd->hqd', p.astype(jnp.bfloat16), v,
                   preferred_element_type=jnp.float32)                # (H, tq, Dhp)
    o = o * pl.reciprocal(l, approx=True)                             # scale on Dhp, not N

    # ---- fused head-merge + output projection: sum_h o_h @ Wp_h (no (H,tq,D) buf) ----
    attn_out = jnp.dot(o[0].astype(jnp.bfloat16), w_projh_ref[0],
                       preferred_element_type=jnp.float32)            # (tq, D) f32 acc
    for h in range(1, num_heads):
        attn_out = attn_out + jnp.dot(o[h].astype(jnp.bfloat16), w_projh_ref[h],
                                      preferred_element_type=jnp.float32)
    attn_out = attn_out + b_proj_ref[...]

    x1 = x + gate_msa_ref[0] * attn_out                               # gated residual

    # ---- MLP branch ----
    mean = jnp.mean(x1, axis=-1, keepdims=True)
    var = jnp.mean((x1 - mean) ** 2, axis=-1, keepdims=True)
    xn2 = (x1 - mean) * jax.lax.rsqrt(var + 1e-6)
    xm2 = xn2 * scale1p_mlp_ref[0] + shift_mlp_ref[0]

    h1 = jnp.dot(xm2.astype(jnp.bfloat16), w_fc1_ref[...],
                 preferred_element_type=jnp.float32) + b_fc1_ref[...]   # (tq, 4D)
    # GELU, tanh approximation (matches nn.GELU(approximate='tanh')).
    g = 0.5 * h1 * (1.0 + jnp.tanh(0.7978845608028654 *
                                   (h1 + 0.044715 * h1 * h1 * h1)))
    h2 = jnp.dot(g.astype(jnp.bfloat16), w_fc2_ref[...],
                 preferred_element_type=jnp.float32) + b_fc2_ref[...]    # (tq, D)

    out_ref[0] = (x1 + gate_mlp_ref[0] * h2).astype(out_ref.dtype)


# ---------------------------------- wrapper -----------------------------------
def dit_block(x, c, params, *, num_heads, seq_tile=None):
    """x: (B, N, D) f32, c: (B, D) f32."""
    B, N, D = x.shape
    H = num_heads
    assert D % H == 0
    Dh = D // H
    mlp_hidden = params["w_fc1"].shape[1]

    # Per-generation sequence tile / VMEM limit (v7x: 64 MiB phys; v6e/v5e: 128 MiB).
    tq = seq_tile if seq_tile is not None else min(128, N)
    assert N % tq == 0 and (tq == N or tq % 16 == 0)   # bf16 (16,128) tiling
    try:
        phys_vmem = int(pltpu.get_tpu_info().vmem_capacity_bytes)
    except Exception:
        phys_vmem = 64 * 1024 * 1024
    vmem_limit = max(32 * 1024 * 1024, (phys_vmem * 3) // 4)

    # Head dim padded to a multiple of 128: zero padding is exact for q@k^T, p@v and
    # the per-head projection, and restores lane-dense unmasked MXU contractions.
    Dhp = Dh if Dh % 128 == 0 else ((Dh + 127) // 128) * 128

    f32, bf16 = jnp.float32, jnp.bfloat16

    # ---- adaLN modulation hoisted out of the kernel (M=B matmul; frees W_ada VMEM) ----
    c_silu = c * jax.nn.sigmoid(c)
    ada = c_silu @ params["w_ada"] + params["b_ada"]                     # (B, 6D)
    (shift_msa, scale_msa, gate_msa,
     shift_mlp, scale_mlp, gate_mlp) = jnp.split(ada, 6, axis=-1)
    shift_msa = shift_msa.reshape(B, 1, D).astype(f32)
    scale1p_msa = (1.0 + scale_msa).reshape(B, 1, D).astype(f32)         # hoist 1+scale
    gate_msa = gate_msa.reshape(B, 1, D).astype(f32)
    shift_mlp = shift_mlp.reshape(B, 1, D).astype(f32)
    scale1p_mlp = (1.0 + scale_mlp).reshape(B, 1, D).astype(f32)
    gate_mlp = gate_mlp.reshape(B, 1, D).astype(f32)

    # ---- weights: bf16 in HBM/VMEM, biases stay f32 ----
    w_qkv = params["w_qkv"].astype(bf16)                                 # (D, 3D)
    b_qkv = params["b_qkv"].astype(f32)                                  # (1, 3D)
    w_projh = params["w_proj"].astype(bf16).reshape(H, Dh, D)            # per-head proj
    if Dhp != Dh:
        w_projh = jnp.pad(w_projh, ((0, 0), (0, Dhp - Dh), (0, 0)))
    b_proj = params["b_proj"].astype(f32)
    w_fc1 = params["w_fc1"].astype(bf16)
    b_fc1 = params["b_fc1"].astype(f32)
    w_fc2 = params["w_fc2"].astype(bf16)
    b_fc2 = params["b_fc2"].astype(f32)

    grid = (B, N // tq)
    cparams = pltpu.CompilerParams(
        dimension_semantics=("parallel", "parallel"),
        vmem_limit_bytes=vmem_limit)

    # ---------------- kernel 1: LN + modulate + QKV projection ----------------
    qkv_cost = pl.CostEstimate(
        flops=2 * B * N * D * 3 * D,
        transcendentals=B * N,
        bytes_accessed=4 * B * N * D + 2 * B * N * 3 * D + 2 * D * 3 * D + 4 * 3 * D)
    qkv = pl.pallas_call(
        qkv_kernel,
        out_shape=jax.ShapeDtypeStruct((B, N, 3 * D), bf16),
        grid_spec=pltpu.PrefetchScalarGridSpec(
            num_scalar_prefetch=0,
            grid=grid,
            in_specs=[
                pl.BlockSpec((1, tq, D), lambda b, n: (b, n, 0)),        # x tile
                pl.BlockSpec((1, 1, D), lambda b, n: (b, 0, 0)),         # shift_msa
                pl.BlockSpec((1, 1, D), lambda b, n: (b, 0, 0)),         # 1+scale_msa
                _const_spec((D, 3 * D), lambda b, n: (0, 0)),            # w_qkv (single-buf)
                _const_spec((1, 3 * D), lambda b, n: (0, 0)),            # b_qkv (single-buf)
            ],
            out_specs=pl.BlockSpec((1, tq, 3 * D), lambda b, n: (b, n, 0)),
        ),
        compiler_params=cparams,
        cost_estimate=qkv_cost,
    )(x, shift_msa, scale1p_msa, w_qkv, b_qkv)

    # ---- head split (+ optional Dh pad) in XLA: layout plumbing only ----
    qkv_h = qkv.reshape(B, N, 3, H, Dh).transpose(2, 0, 3, 1, 4)         # (3, B, H, N, Dh)
    q, k, v = qkv_h[0], qkv_h[1], qkv_h[2]
    if Dhp != Dh:
        pad = ((0, 0), (0, 0), (0, 0), (0, Dhp - Dh))
        q = jnp.pad(q, pad)
        k = jnp.pad(k, pad)
        v = jnp.pad(v, pad)

    # -------- kernel 2: attention + proj + residual + MLP + residual ----------
    attn_cost = pl.CostEstimate(
        flops=(4 * B * H * N * N * Dhp            # scores + PV
               + 2 * B * N * H * Dhp * D          # output projection
               + 4 * B * N * D * mlp_hidden),     # fc1 + fc2
        transcendentals=B * H * N * N + B * N * mlp_hidden + 2 * B * N,
        bytes_accessed=(2 * 4 * B * N * D                       # x in + out
                        + 3 * 2 * B * H * N * Dhp               # q, k, v
                        + 2 * (H * Dhp * D + 2 * D * mlp_hidden)))
    kernel2 = functools.partial(attn_mlp_kernel, num_heads=H,
                                sm_scale=1.0 / math.sqrt(Dh))
    out = pl.pallas_call(
        kernel2,
        out_shape=jax.ShapeDtypeStruct((B, N, D), x.dtype),
        grid_spec=pltpu.PrefetchScalarGridSpec(
            num_scalar_prefetch=0,
            grid=grid,
            in_specs=[
                pl.BlockSpec((1, tq, D), lambda b, n: (b, n, 0)),        # x tile
                pl.BlockSpec((1, H, tq, Dhp), lambda b, n: (b, 0, n, 0)),# q tile (head-major)
                pl.BlockSpec((1, H, N, Dhp), lambda b, n: (b, 0, 0, 0)), # k (resident per b)
                pl.BlockSpec((1, H, N, Dhp), lambda b, n: (b, 0, 0, 0)), # v (resident per b)
                pl.BlockSpec((1, 1, D), lambda b, n: (b, 0, 0)),         # gate_msa
                pl.BlockSpec((1, 1, D), lambda b, n: (b, 0, 0)),         # shift_mlp
                pl.BlockSpec((1, 1, D), lambda b, n: (b, 0, 0)),         # 1+scale_mlp
                pl.BlockSpec((1, 1, D), lambda b, n: (b, 0, 0)),         # gate_mlp
                _const_spec((H, Dhp, D), lambda b, n: (0, 0, 0)),        # w_proj per head
                _const_spec((1, D), lambda b, n: (0, 0)),                # b_proj
                _const_spec((D, mlp_hidden), lambda b, n: (0, 0)),       # w_fc1
                _const_spec((1, mlp_hidden), lambda b, n: (0, 0)),       # b_fc1
                _const_spec((mlp_hidden, D), lambda b, n: (0, 0)),       # w_fc2
                _const_spec((1, D), lambda b, n: (0, 0)),                # b_fc2
            ],
            out_specs=pl.BlockSpec((1, tq, D), lambda b, n: (b, n, 0)),
        ),
        compiler_params=cparams,
        cost_estimate=attn_cost,
    )(x, q, k, v, gate_msa, shift_mlp, scale1p_mlp, gate_mlp,
      w_projh, b_proj, w_fc1, b_fc1, w_fc2, b_fc2)
    return out


# ----------------------------- pure-JAX reference ------------------------------
def ref_dit_block(x, c, p, *, num_heads):
    def ln(v):
        m = v.mean(-1, keepdims=True)
        var = ((v - m) ** 2).mean(-1, keepdims=True)
        return (v - m) / jnp.sqrt(var + 1e-6)

    def modulate(v, sh, sc):
        return v * (1.0 + sc[:, None, :]) + sh[:, None, :]

    B, N, D = x.shape
    H, Dh = num_heads, D // num_heads

    c_silu = c * jax.nn.sigmoid(c)
    ada = c_silu @ p["w_ada"] + p["b_ada"]
    (shift_msa, scale_msa, gate_msa,
     shift_mlp, scale_mlp, gate_mlp) = jnp.split(ada, 6, axis=-1)

    xm = modulate(ln(x), shift_msa, scale_msa)
    qkv = (xm @ p["w_qkv"] + p["b_qkv"]).reshape(B, N, 3, H, Dh)
    qkv = qkv.transpose(2, 0, 3, 1, 4)                   # (3, B, H, N, Dh)
    q, k, v = qkv[0], qkv[1], qkv[2]
    s = (q @ jnp.swapaxes(k, -1, -2)) * (Dh ** -0.5)
    attn = jax.nn.softmax(s, axis=-1) @ v                # (B, H, N, Dh)
    attn = attn.transpose(0, 2, 1, 3).reshape(B, N, D)
    attn = attn @ p["w_proj"] + p["b_proj"]
    x = x + gate_msa[:, None, :] * attn

    xm2 = modulate(ln(x), shift_mlp, scale_mlp)
    h = xm2 @ p["w_fc1"] + p["b_fc1"]
    g = 0.5 * h * (1.0 + jnp.tanh(jnp.sqrt(2.0 / jnp.pi) *
                                  (h + 0.044715 * h ** 3)))
    h2 = g @ p["w_fc2"] + p["b_fc2"]
    return x + gate_mlp[:, None, :] * h2


# ------------------------------------ main --------------------------------------
if __name__ == "__main__":
    B, N, D = 2, 32, 32            # batch, tokens, hidden_size (toy shapes)
    NUM_HEADS = 4
    MLP_HIDDEN = int(D * 4.0)
    SEQ_TILE = 16                  # exercises the (B, N//tq) grid: 2 x 2 steps

    key = jax.random.PRNGKey(0)
    keys = jax.random.split(key, 16)

    def init_w(k, shape, scale=0.05):
        return (scale * jax.random.normal(k, shape)).astype(jnp.float32)

    params = {
        "w_ada":  init_w(keys[0], (D, 6 * D)),
        "b_ada":  init_w(keys[1], (1, 6 * D), 0.02),
        "w_qkv":  init_w(keys[2], (D, 3 * D)),
        "b_qkv":  init_w(keys[3], (1, 3 * D), 0.02),
        "w_proj": init_w(keys[4], (D, D)),
        "b_proj": init_w(keys[5], (1, D), 0.02),
        "w_fc1":  init_w(keys[6], (D, MLP_HIDDEN)),
        "b_fc1":  init_w(keys[7], (1, MLP_HIDDEN), 0.02),
        "w_fc2":  init_w(keys[8], (MLP_HIDDEN, D)),
        "b_fc2":  init_w(keys[9], (1, D), 0.02),
    }

    x = jax.random.normal(keys[10], (B, N, D), dtype=jnp.float32)
    c = jax.random.normal(keys[11], (B, D), dtype=jnp.float32)

    out = dit_block(x, c, params, num_heads=NUM_HEADS, seq_tile=SEQ_TILE)
    out = jax.block_until_ready(out)

    ref = ref_dit_block(x, c, params, num_heads=NUM_HEADS)
    # bf16 matmuls + approx reciprocal => looser tolerance than the f32 reference.
    np.testing.assert_allclose(np.asarray(out), np.asarray(ref),
                               rtol=5e-2, atol=5e-2)

    print("KERNEL_OK")
</pallas_src>

<mosaic_0001>
module attributes {stable_mosaic.version = 11 : i64} {
  func.func @qkv_kernel(%arg0: i32, %arg1: i32, %arg2: memref<1x16x32xf32, #tpu.memory_space<vmem>>, %arg3: memref<1x1x32xf32, #tpu.memory_space<vmem>>, %arg4: memref<1x1x32xf32, #tpu.memory_space<vmem>>, %arg5: memref<32x96xbf16, #tpu.memory_space<vmem>>, %arg6: memref<1x96xf32, #tpu.memory_space<vmem>>, %arg7: memref<1x16x96xbf16, #tpu.memory_space<vmem>>) attributes {dimension_semantics = [#tpu.dimension_semantics<parallel>, #tpu.dimension_semantics<parallel>], iteration_bounds = array<i64: 2, 2>, scalar_prefetch = 0 : i64, scratch_operands = 0 : i64, tpu.core_type = #tpu.core_type<tc>, window_params = [{transform_indices = @transform_0, window_bounds = array<i64: 1, 16, 32>}, {transform_indices = @transform_1, window_bounds = array<i64: 1, 1, 32>}, {transform_indices = @transform_2, window_bounds = array<i64: 1, 1, 32>}, {pipeline_mode = #tpu.pipeline_mode<synchronous>, transform_indices = @transform_3, window_bounds = array<i64: 32, 96>}, {pipeline_mode = #tpu.pipeline_mode<synchronous>, transform_indices = @transform_4, window_bounds = array<i64: 1, 96>}, {transform_indices = @transform_5, window_bounds = array<i64: 1, 16, 96>}]} {
    %c0 = arith.constant 0 : index
    %c0_0 = arith.constant 0 : index
    %c0_1 = arith.constant 0 : index
    %0 = vector.load %arg2[%c0, %c0_0, %c0_1] : memref<1x16x32xf32, #tpu.memory_space<vmem>>, vector<1x16x32xf32>
    %1 = vector.shape_cast %0 : vector<1x16x32xf32> to vector<16x32xf32>
    %cst = arith.constant dense<0.000000e+00> : vector<16xf32>
    %2 = vector.multi_reduction <add>, %1, %cst [1] : vector<16x32xf32> to vector<16xf32>
    %3 = vector.shape_cast %2 : vector<16xf32> to vector<16x1xf32>
    %cst_2 = arith.constant 3.200000e+01 : f32
    %4 = vector.broadcast %cst_2 : f32 to vector<16x1xf32>
    %5 = arith.divf %3, %4 : vector<16x1xf32>
    %6 = vector.broadcast %5 : vector<16x1xf32> to vector<16x32xf32>
    %7 = arith.subf %1, %6 : vector<16x32xf32>
    %8 = arith.mulf %7, %7 : vector<16x32xf32>
    %cst_3 = arith.constant dense<0.000000e+00> : vector<16xf32>
    %9 = vector.multi_reduction <add>, %8, %cst_3 [1] : vector<16x32xf32> to vector<16xf32>
    %10 = vector.shape_cast %9 : vector<16xf32> to vector<16x1xf32>
    %cst_4 = arith.constant 3.200000e+01 : f32
    %11 = vector.broadcast %cst_4 : f32 to vector<16x1xf32>
    %12 = arith.divf %10, %11 : vector<16x1xf32>
    %13 = vector.broadcast %5 : vector<16x1xf32> to vector<16x32xf32>
    %14 = arith.subf %1, %13 : vector<16x32xf32>
    %cst_5 = arith.constant 9.99999997E-7 : f32
    %15 = vector.broadcast %cst_5 : f32 to vector<16x1xf32>
    %16 = arith.addf %12, %15 : vector<16x1xf32>
    %17 = math.rsqrt %16 : vector<16x1xf32>
    %18 = vector.broadcast %17 : vector<16x1xf32> to vector<16x32xf32>
    %19 = arith.mulf %14, %18 : vector<16x32xf32>
    %c0_6 = arith.constant 0 : index
    %c0_7 = arith.constant 0 : index
    %c0_8 = arith.constant 0 : index
    %20 = vector.load %arg4[%c0_6, %c0_7, %c0_8] : memref<1x1x32xf32, #tpu.memory_space<vmem>>, vector<1x1x32xf32>
    %21 = vector.shape_cast %20 : vector<1x1x32xf32> to vector<1x32xf32>
    %22 = vector.broadcast %21 : vector<1x32xf32> to vector<16x32xf32>
    %23 = arith.mulf %19, %22 : vector<16x32xf32>
    %c0_9 = arith.constant 0 : index
    %c0_10 = arith.constant 0 : index
    %c0_11 = arith.constant 0 : index
    %24 = vector.load %arg3[%c0_9, %c0_10, %c0_11] : memref<1x1x32xf32, #tpu.memory_space<vmem>>, vector<1x1x32xf32>
    %25 = vector.shape_cast %24 : vector<1x1x32xf32> to vector<1x32xf32>
    %26 = vector.broadcast %25 : vector<1x32xf32> to vector<16x32xf32>
    %27 = arith.addf %23, %26 : vector<16x32xf32>
    %28 = arith.truncf %27 : vector<16x32xf32> to vector<16x32xbf16>
    %c0_12 = arith.constant 0 : index
    %c0_13 = arith.constant 0 : index
    %29 = vector.load %arg5[%c0_12, %c0_13] : memref<32x96xbf16, #tpu.memory_space<vmem>>, vector<32x96xbf16>
    %cst_14 = arith.constant dense<0.000000e+00> : vector<16x96xf32>
    %30 = tpu.matmul %28, %29, %cst_14 {dimension_numbers = #tpu.dot_dimension_numbers<[1], [0], [0], [1], [0, 0, 1, 1], [], []>} : vector<16x32xbf16>, vector<32x96xbf16>, vector<16x96xf32> -> vector<16x96xf32>
    %c0_15 = arith.constant 0 : index
    %c0_16 = arith.constant 0 : index
    %31 = vector.load %arg6[%c0_15, %c0_16] : memref<1x96xf32, #tpu.memory_space<vmem>>, vector<1x96xf32>
    %32 = vector.broadcast %31 : vector<1x96xf32> to vector<16x96xf32>
    %33 = arith.addf %30, %32 : vector<16x96xf32>
    %34 = arith.truncf %33 : vector<16x96xf32> to vector<16x96xbf16>
    %c0_17 = arith.constant 0 : index
    %c0_18 = arith.constant 0 : index
    %c0_19 = arith.constant 0 : index
    %35 = vector.load %arg7[%c0_17, %c0_18, %c0_19] : memref<1x16x96xbf16, #tpu.memory_space<vmem>>, vector<1x16x96xbf16>
    %36 = vector.shape_cast %35 : vector<1x16x96xbf16> to vector<16x96xbf16>
    %37 = vector.shape_cast %34 : vector<16x96xbf16> to vector<1x16x96xbf16>
    tpu.vector_store %arg7[%c0_17, %c0_18, %c0_19], %37 {strides = array<i32>} : memref<1x16x96xbf16, #tpu.memory_space<vmem>>, vector<1x16x96xbf16>,
    return
  }
  func.func @transform_0(%arg0: i32, %arg1: i32) -> (i32, i32, i32) {
    %c0_i32 = arith.constant 0 : i32
    %c0_i32_0 = arith.constant 0 : i32
    return %arg0, %arg1, %c0_i32 : i32, i32, i32
  }
  func.func @transform_1(%arg0: i32, %arg1: i32) -> (i32, i32, i32) {
    %c0_i32 = arith.constant 0 : i32
    %c0_i32_0 = arith.constant 0 : i32
    %c0_i32_1 = arith.constant 0 : i32
    return %arg0, %c0_i32, %c0_i32_0 : i32, i32, i32
  }
  func.func @transform_2(%arg0: i32, %arg1: i32) -> (i32, i32, i32) {
    %c0_i32 = arith.constant 0 : i32
    %c0_i32_0 = arith.constant 0 : i32
    %c0_i32_1 = arith.constant 0 : i32
    return %arg0, %c0_i32, %c0_i32_0 : i32, i32, i32
  }
  func.func @transform_3(%arg0: i32, %arg1: i32) -> (i32, i32) {
    %c0_i32 = arith.constant 0 : i32
    %c0_i32_0 = arith.constant 0 : i32
    %c0_i32_1 = arith.constant 0 : i32
    return %c0_i32, %c0_i32_0 : i32, i32
  }
  func.func @transform_4(%arg0: i32, %arg1: i32) -> (i32, i32) {
    %c0_i32 = arith.constant 0 : i32
    %c0_i32_0 = arith.constant 0 : i32
    %c0_i32_1 = arith.constant 0 : i32
    return %c0_i32, %c0_i32_0 : i32, i32
  }
  func.func @transform_5(%arg0: i32, %arg1: i32) -> (i32, i32, i32) {
    %c0_i32 = arith.constant 0 : i32
    %c0_i32_0 = arith.constant 0 : i32
    return %arg0, %arg1, %c0_i32 : i32, i32, i32
  }
}

</mosaic_0001>

<bundles_post_ra>
// kernel: tpu_custom_call.1
= control target key start
LH: loop header
LB: loop body
LE: loop exit
PB: predicated region body
PF: predicated region fallthrough
CT: control target
= control target key end

     0   :  { %s1174_s0 = inlined_call_operand.hbm [shape: f32[2,32,32], index: 0, kind: input, shape index: {}]   ;;  %s1175_s1 = inlined_call_operand.vmem [shape: f32[2,1,32], index: 1, kind: input, shape index: {}]   ;;  %s1176_s2 = inlined_call_operand.vmem [shape: f32[2,1,32], index: 2, kind: input, shape index: {}]   ;;  %s1177_s3 = inlined_call_operand.hbm [shape: bf16[32,96], index: 3, kind: input, shape index: {}]   ;;  %s1178_s4 = inlined_call_operand.vmem [shape: f32[1,96], index: 4, kind: input, shape index: {}]   ;;  %s1179_s5 = inlined_call_operand.hbm [shape: bf16[2,32,96], index: 5, kind: output, shape index: {}]  }
   0x1   :  { %1190 = sst [smem:[#allocation16_spill]] %s1177_s3 }
   0x2   :  { %1191 = sst [smem:[#allocation17_spill]] %s1179_s5 }
   0x3   :  { %10 = vsyncpa [#allocation3], 0 }
   0x4   :  { %12 = vsyncpa [#allocation3 + $0x1], 0 }
   0x5   :  { %13 = vsyncpa [#allocation6], 0 }
   0x6   :  { %14 = vsyncpa [#allocation4], 0 }
   0x7   :  { %16 = vsyncpa [#allocation4 + $0x1], 0  ;;  %s914_s18 = smov 0   ;;  %s916_s19 = smov 0  }
   0x8   :  { %s918_s20 = smov 0   ;;  %s920_s21 = smov 0  }
   0x9   :  { %s922_s22 = smov 0   ;;  %s924_s23 = smov 0  }
   0xa   :  { %s926_s24 = smov 0   ;;  %s928_s25 = smov 0  }
   0xb LB: > { %1192 = sst [smem:[#allocation11_spill]] %s843_s18  ;;  %s568_s26 = sadd.s32 4294967295, %s871_s25   ;;  %s871_s25 = sphi %s928_s25, %s22_s25   ;;  %s867_s24 = sphi %s926_s24, %s1223_s24   ;;  %s863_s23 = sphi %s924_s23, %s1217_s23   ;;  %s859_s22 = sphi %s922_s22, %s1222_s22   ;;  %s855_s21 = sphi %s920_s21, %s1216_s21   ;;  %s851_s20 = sphi %s918_s20, %s1221_s20   ;;  %s847_s19 = sphi %s916_s19, %s1220_s19   ;;  %s843_s18 = sphi %s914_s18, %s1219_s18  }
   0xc   : > { %1193 = sst [smem:[#allocation12_spill]] %s863_s23  ;;  %s569_s27 = sadd.s32 4294967294, %s871_s25  }
   0xd   : > { %p56_p0 = scmp.ne.s32.totalorder %s847_s19, %s843_s18  ;;  %p958_p1 = scmp.eq.s32.totalorder %s568_s26, 0 }
   0xe   : > { %p962_p2 = scmp.eq.s32.totalorder %s568_s26, 3  ;;  %p182_p3 = scmp.eq.s32.totalorder %s569_s27, 3 }
   0xf   : > { %s1194_s28 = scalar_select %p958_p1, 1, 0 }
  0x10   : > { %s1195_s29 = scalar_select %p962_p2, 1, 0 }
  0x11   : > { %p968_p4 = por %p958_p1, %p56_p0  ;;  %p570_p5 = scmp.ge.s32.totalorder %s871_s25, 1 }
  0x12   : > { %p973_p6 = por %p182_p3, %p56_p0  ;;  %p189_p7 = scmp.lt.s32.totalorder %s871_s25, 5 }
  0x13   : > { %s1196_s30 = scalar_select %p968_p4, 1, 0 }
  0x14   : > { %s1197_s6 = scalar_select %p973_p6, 1, 0 }
  0x15   : > { %p978_p8 = pnand %p570_p5, %p189_p7  ;;  %s873_s8 = smov [#allocation5]  }
  0x16   : > { %1198 = sst [smem:[#allocation13_spill]] %s1197_s6  ;;  %s201_s9 = sshll.u32 %s873_s8, 4  ;;  %s202_s9 = int_to_ptr.vmem [resolvable:$true] %s201_s9 }
  0x17   : > { %s1199_s7 = scalar_select %p978_p8, 1, 0 }
  0x18   : > { %p616_p9 = pneg %p978_p8  ;;  %s1201_s3 = sld [smem:[#allocation16_spill]] }
  0x1a   : > { %p986_p10 = pnand %p616_p9, %p958_p1 }
  0x1c   : > { %p713_p12 = pneg %p986_p10 }
  0x1e   : > { %s711_s13 = scalar_lea.hbm %s1201_s3, 256 }
  0x1f   : > { %p712_p11 = scmp.ne.s32.totalorder %s1201_s3, %s711_s13  ;;  %p718_p3 = scmp.lt.u32.totalorder %s711_s13, %s1201_s3 }
  0x21   : > { %p714_p13 = pnand %p713_p12, %p712_p11 }
  0x23   : > { %p715_p0 = pneg %p714_p13 }
  0x25   : > { %p720_p5 = pnand %p718_p3, %p715_p0 }
  0x27   : > { %723 = shalt.err (!%p720_p5)
}
  0x28   : > { %s724_s26 = scalar_lea.vmem %s202_s9, 256  ;;  %p732_p1 = scmp.lt.s32.totalorder %s202_s9, %s202_s9 }
  0x29   : > { %p725_p7 = scmp.ne.s32.totalorder %s202_s9, %s724_s26  ;;  %p733_p4 = scmp.lt.s32.totalorder %s724_s26, %s724_s26 }
  0x2b   : > { %p727_p9 = pnand %p725_p7, %p713_p12  ;;  %p734_p8 = por %p733_p4, %p732_p1 }
  0x2d   : > { %p728_p6 = pneg %p727_p9 }
  0x2f   : > { %p735_p2 = pnand %p734_p8, %p728_p6 }
  0x31   : > { %738 = shalt.err (!%p735_p2)
}
  0x32   : > { %s874_s27 = smov 64   ;;  %s875_s8 = smov 4  }
  0x33   : > { %619 = dma.hbm_to_vmem [thread:$0]  (!%p986_p10), %s1201_s3, 256, %s202_s9, [#allocation6], %s874_s27, %s874_s27, %s875_s8  }
  0x34   : > { %s31_s13 = sadd.s32 1, %s863_s23  ;;  %s34_s14 = sadd.s32 1, %s867_s24 }
  0x35   : > { %p32_p1 = scmp.ge.s32.totalorder %s31_s13, 2  ;;  %s43_s15 = sadd.s32 1, %s851_s20 }
  0x36   : > { %p50_p2 = scmp.ne.s32.totalorder %s851_s20, %s847_s19  ;;  %p51_p4 = scmp.eq.s32.totalorder %s871_s25, 0 }
  0x37   : > { %s1225_s13 = smov (%p32_p1, %s31_s13), 0  ;;  %s1227_s14 = smov (!%p32_p1, %s34_s14), %s867_s24 }
  0x38   : > { %1202 = sst [smem:[#allocation14_spill]] %s1225_s13  ;;  %s39_s16 = ssub.s32 %s863_s23, %s1225_s13 }
  0x39   : > { %p36_p6 = scmp.ge.s32.totalorder %s1227_s14, 2  ;;  %p1203_p8 = scmp.ne.s32.totalorder %s1195_s29, 0 }
  0x3a   : > { %p1023_p10 = por %p51_p4, %p50_p2  ;;  %p629_p12 = scmp.lt.s32.totalorder %s871_s25, 4 }
  0x3b   : > { %p1019_p11 = por %p1203_p8, %p50_p2  ;;  %s1229_s14 = smov (%p36_p6, %s1227_s14), 0 }
  0x3c   : > { %1206 = sst [smem:[#allocation15_spill]] %s1229_s14  ;;  %s218_s17 = sand.u32 1, %s851_s20  }
  0x3d   : > { %s574_s26 = sshll.u32 %s863_s23, 1  ;;  %s38_s27 = ssub.s32 %s867_s24, %s1229_s14 }
  0x3e   : > { %s40_s8 = sor.u32 %s39_s16, %s38_s27  ;;  %s573_s11 = sshll.u32 %s218_s17, 4 }
  0x3f   : > { %p41_p13 = scmp.eq.s32.totalorder %s40_s8, 0  ;;  %s575_s29 = sshll.u32 %s867_s24, 2 }
  0x40   : > { %s222_s12 = scalar_lea.vmem [#allocation2], %s573_s11  ;;  %s228_s6 = sadd.s32 %s575_s29, %s574_s26 }
  0x41   : > { %s231_s3 = sshll.u32 %s222_s12, 4  ;;  %s576_s18 = sshll.u32 %s228_s6, 7  ;;  %s1038_s3 = int_to_ptr.vmem [resolvable:$true] %s231_s3 }
  0x42   : > { %s1036_s13 = scalar_select %p41_p13, %s851_s20, %s43_s15  }
  0x43   : > { %p1044_p0 = pnand %p629_p12, %p1023_p10  ;;  %s1051_s16 = scalar_lea.hbm %s1174_s0, %s576_s18 }
  0x44   : > { %s1053_s15 = scalar_lea.sflag [#allocation3], %s218_s17  ;;  %s739_s6 = scalar_lea.hbm %s1051_s16, 256 }
  0x45   : > { %p740_p3 = scmp.ne.s32.totalorder %s1051_s16, %s739_s6  ;;  %p741_p5 = pneg %p1044_p0 }
  0x46   : > { %s744_s14 = scalar_lea.hbm %s1174_s0, 1024  ;;  %p745_p1 = scmp.lt.u32.totalorder %s1051_s16, %s1174_s0 }
  0x47   : > { %p742_p7 = pnand %p741_p5, %p740_p3  ;;  %p746_p2 = scmp.lt.u32.totalorder %s744_s14, %s739_s6 }
  0x48   : > { %p748_p6 = scmp.lt.u32.totalorder %s739_s6, %s1051_s16 }
  0x49   : > { %p743_p9 = pneg %p742_p7  ;;  %p747_p4 = por %p746_p2, %p745_p1 }
  0x4b   : > { %p749_p8 = por %p748_p6, %p747_p4 }
  0x4d   : > { %p750_p10 = pnand %p749_p8, %p743_p9 }
  0x4f   : > { %753 = shalt.err (!%p750_p10)
}
  0x50   : > { %s754_s17 = scalar_lea.vmem %s1038_s3, 256  ;;  %s876_s27 = smov [#allocation2]  }
  0x51   : > { %p755_p12 = scmp.ne.s32.totalorder %s1038_s3, %s754_s17  ;;  %s759_s8 = sshll.u32 %s876_s27, 4  ;;  %s760_s8 = int_to_ptr.vmem [resolvable:$false] %s759_s8 }
  0x52   : > { %s761_s11 = scalar_lea.vmem %s760_s8, 512  ;;  %p762_p7 = scmp.lt.s32.totalorder %s1038_s3, %s760_s8 }
  0x53   : > { %p757_p13 = pnand %p755_p12, %p741_p5  ;;  %p763_p1 = scmp.lt.s32.totalorder %s761_s11, %s754_s17 }
  0x55   : > { %p758_p3 = pneg %p757_p13  ;;  %p764_p2 = por %p763_p1, %p762_p7 }
  0x57   : > { %p765_p4 = pnand %p764_p2, %p758_p3 }
  0x59   : > { %768 = shalt.err (!%p765_p4)
}
  0x5a   : > { %s877_s29 = smov 128   ;;  %s878_s12 = smov 8  }
  0x5b   : > { %623 = dma.hbm_to_vmem [thread:$0]  (!%p1044_p0), %s1051_s16, 256, %s1038_s3, %s1053_s15, %s877_s29, %s877_s29, %s878_s12  }
  0x5c   : > { %p1208_p5 = scmp.ne.s32.totalorder %s1199_s7, 0 }
  0x5d   : > { %s1084_s6 = sand.u32 (!%p1208_p5), 1, %s847_s19   ;;  %p1209_p9 = scmp.ne.s32.totalorder (!%p1208_p5), %s1196_s30, 0 }
  0x5e   : > { %255 = sbr.rel (%p1208_p5) target bundleno = 658 (0x292), region = 40  ;;  %s578_s9 = sshll.u32 (!%p1208_p5), %s1084_s6, 4 }
  0x5f   : > { %s258_s23 = scalar_lea.sflag (!%p1208_p5), [#allocation3], %s1084_s6  ;;  %s261_s14 = scalar_lea.vmem (!%p1208_p5), [#allocation2], %s578_s9 }
  0x65   : > { %830 = dma.done.wait (%p1209_p9), %s258_s23, 256  }
  0x66   : > { %832 = vsyncadd (%p1209_p9), %s258_s23, 4294967040  ;;  %p1210_p6 = scmp.ne.s32.totalorder %s1194_s28, 0 }
  0x68   : > { %834 = dma.done.wait (%p1210_p6), [#allocation6], 256  }
  0x69   : > { %836 = vsyncadd (%p1210_p6), [#allocation6], 4294967040  ;;  %vm309_vm0 = vcmask 261120   ;;  %v307_v0 = vld [vmem:[%s261_s14] sm:$0xff]  ;;  %v308_v1 = vld [vmem:[%s261_s14 + $0x8] sm:$0xff]  ;;  %v879_v15 = vmov 0.0  }
  0x6a   : > { %v310_v2 = vsel %vm309_vm0, %v307_v0, 0.0  ;;  %v313_v3 = vsel %vm309_vm0, %v308_v1, 0.0  ;;  %v705_v14 = vld [vmem:[#allocation5] sm:$0xff]   ;;  %600 = vmatprep.subr.bf16.mxu0 %v879_v15  ;;  %v706_v16 = vld [vmem:[#allocation5 + $0x8] sm:$0xff]   ;;  %vm880_vm1 = vmmov 0   ;;  %p299_p0 = scmp.lt.s32.totalorder %s859_s22, 1 }
  0x6b   : > { %311 = vadd.xlane.f32.xlu0 %v310_v2  ;;  %601 = vmatpush3.bf16.msra.mxu0 %v705_v14  ;;  %s580_s18 = sshll.u32 %s1084_s6, 3  ;;  %s590_s26 = sshll.u32 %s855_s21, 1  ;;  %v583_v34 = vld [vmem:[%s1178_s4] ss:$0 sm:$0xff]  ;;  %vm431_vm2 = vcmask 781312  }
  0x6c   : > { %604 = vmatprep.mubr.msk.bf16.mxu0 %vm880_vm1, %v879_v15  ;;  %602 = vmatprep.subr.bf16.mxu0 %v879_v15  ;;  %s300_s3 = scalar_select %p299_p0, %s859_s22, 1 }
  0x6d   : > { %s591_s17 = sshll.u32 %s859_s22, 2  ;;  %s297_s29 = scalar_lea.vmem [#allocation7], %s580_s18 }
  0x6e   : > { %s304_s30 = scalar_lea.vmem %s1176_s2, %s300_s3  ;;  %s301_s15 = scalar_lea.vmem %s1175_s1, %s300_s3 }
  0x6f   : > { %314 = vadd.xlane.f32.xlu0 %v313_v3  ;;  %603 = vmatpush3.bf16.msra.mxu0 %v706_v16  ;;  %v581_v25 = vld [vmem:[%s304_s30] ss:$0 sm:$0xff]  ;;  %s447_s11 = sadd.s32 %s591_s17, %s590_s26  ;;  %s450_s12 = sshll.u32 %s297_s29, 4  ;;  %s1120_s12 = int_to_ptr.vmem [resolvable:$true] %s450_s12 }
  0x70   : > { %v582_v29 = vld [vmem:[%s301_s15] ss:$0 sm:$0xff]  ;;  %s592_s9 = sshll.u32 %s447_s11, 6  ;;  %s1211_s23 = sld [smem:[#allocation17_spill]] }
  0x71   : > { %s435_s5 = scalar_lea.sflag [#allocation4], %s1084_s6  ;;  %s769_s28 = scalar_lea.vmem %s1120_s12, 128 }
  0x72   : > { %p770_p8 = scmp.ne.s32.totalorder %s1120_s12, %s769_s28  ;;  %s881_s30 = smov [#allocation7]  }
  0x73   : > { %s773_s7 = sshll.u32 %s881_s30, 4  ;;  %s774_s7 = int_to_ptr.vmem [resolvable:$false] %s773_s7 }
  0x74   : > { %p771_p10 = pnand %p770_p8, %p1019_p11  ;;  %s775_s16 = scalar_lea.vmem %s774_s7, 256 }
  0x75   : > { %p776_p13 = scmp.lt.s32.totalorder %s1120_s12, %s774_s7  ;;  %p777_p3 = scmp.lt.s32.totalorder %s775_s16, %s769_s28 }
  0x76   : > { %s1212_s14 = smov %s1211_s23  ;;  %s1118_s3 = scalar_lea.hbm %s1211_s23, %s592_s9 }
  0x77   : > { %p772_p12 = pneg %p771_p10  ;;  %p778_p7 = por %p777_p3, %p776_p13 }
  0x79   : > { %p779_p1 = pnand %p778_p7, %p772_p12 }
  0xf8   : > { %v312_v4 = vpop.xlane.xlu0 %311 }
  0xf9   : > { %v317_v5 = vmul.f32 0.03125, %v312_v4 }
  0xfb   : > { %v319_v6 = vsub.f32 %v307_v0, %v317_v5 }
  0xfc   : > { %v315_v7 = vpop.xlane.xlu0 %314 }
  0xfd   : > { %v318_v8 = vmul.f32 0.03125, %v315_v7  ;;  %v321_v9 = vmul.f32 %v319_v6, %v319_v6 }
  0xff   : > { %v320_v10 = vsub.f32 %v308_v1, %v318_v8  ;;  %v323_v11 = vsel %vm309_vm0, %v321_v9, 0.0 }
 0x100   : > { %324 = vadd.xlane.f32.xlu1 %v323_v11 }
 0x101   : > { %v322_v12 = vmul.f32 %v320_v10, %v320_v10 }
 0x103   : > { %v326_v13 = vsel %vm309_vm0, %v322_v12, 0.0 }
 0x104   : > { %327 = vadd.xlane.f32.xlu1 %v326_v13 }
 0x18d   : > { %v325_v17 = vpop.xlane.xlu1 %324 }
 0x18e   : > { %v329_v18 = vmul.f32 0.03125, %v325_v17 }
 0x190   : > { %v331_v19 = vadd.f32 1e-06, %v329_v18 }
 0x191   : > { %v328_v20 = vpop.xlane.xlu1 %327 }
 0x192   : > { %707 = vrsqrt.f32 %v331_v19  ;;  %v330_v21 = vmul.f32 0.03125, %v328_v20 }
 0x194   : > { %v332_v22 = vadd.f32 1e-06, %v330_v21 }
 0x196   : > { %709 = vrsqrt.f32 %v332_v22 }
 0x19c   : > { %v708_v23 = vpop.eup %707 }
 0x19d   : > { %v335_v24 = vmul.f32 %v708_v23, %v319_v6 }
 0x19f   : > { %v344_v28 = vmul.f32 %v581_v25, %v335_v24 }
 0x1a0   : > { %v710_v26 = vpop.eup %709 }
 0x1a1   : > { %v336_v27 = vmul.f32 %v710_v26, %v320_v10  ;;  %v353_v31 = vadd.f32 %v582_v29, %v344_v28 }
 0x1a3   : > { %v345_v30 = vmul.f32 %v581_v25, %v336_v27 }
 0x1a5   : > { %v354_v32 = vadd.f32 %v582_v29, %v345_v30 }
 0x1a7   : > { %v355_v33 = vpack.c.bf16 %v354_v32, %v353_v31 }
 0x1a9   : > { %605 = vmatmul.mubr.msk.bf16.vlgmr.msra.gmra.mrb[0].mxu0 %vm309_vm0, %v355_v33 }
 0x27c   : > { %v416_v35 = vpop.f32.mrb[0].mxu0 }
 0x27d   : > { %v417_v36 = vadd.f32 %v583_v34, %v416_v35  ;;  %v606_v37 = vpop.f32.mrb[1].mxu0 }
 0x27e   : > { %v419_v38 = vpop.f32.mrb[2].mxu0 }
 0x27f   : > { %v595_v39 = vpack.c.bf16 %v417_v36, %v417_v36  ;;  %v420_v40 = vadd.f32 %v583_v34, %v419_v38  ;;  %v607_v41 = vpop.f32.mrb[3].mxu0 }
 0x281   : > { %432 = vst.msk [vmem:[%s297_s29] sm:$0xf] %vm431_vm2, %v595_v39  ;;  %v596_v42 = vpack.c.bf16 %v420_v40, %v420_v40 }
 0x283   : > { %433 = vst.msk [vmem:[%s297_s29 + $0x4] sm:$0xf] %vm431_vm2, %v596_v42 }
 0x284   : > { %782 = shalt.err (!%p779_p1)
}
 0x285   : > { %s783_s15 = scalar_lea.hbm %s1118_s3, 128  ;;  %s787_s17 = scalar_lea.hbm %s1212_s14, 512 }
 0x286   : > { %p784_p2 = scmp.ne.s32.totalorder %s1118_s3, %s783_s15  ;;  %p788_p9 = scmp.lt.u32.totalorder %s1118_s3, %s1212_s14 }
 0x287   : > { %p789_p6 = scmp.lt.u32.totalorder %s787_s17, %s783_s15  ;;  %p791_p8 = scmp.lt.u32.totalorder %s783_s15, %s1118_s3 }
 0x288   : > { %p785_p4 = pnand %p784_p2, %p1019_p11 }
 0x289   : > { %p790_p0 = por %p789_p6, %p788_p9 }
 0x28a   : > { %p786_p5 = pneg %p785_p4 }
 0x28b   : > { %p792_p10 = por %p791_p8, %p790_p0 }
 0x28d   : > { %p793_p12 = pnand %p792_p10, %p786_p5 }
 0x28f   : > { %796 = shalt.err (!%p793_p12)
}
 0x290   : > { %s882_s11 = smov 64   ;;  %s883_s29 = smov 4  }
 0x291   : > { %614 = dma.vmem_to_hbm [thread:$0]  (%p1019_p11), %s1120_s12, 128, %s1118_s3, %s435_s5, %s882_s11, %s882_s11, %s883_s29  }
 0x292 PF: > { %s1213_s9 = sld [smem:[#allocation11_spill]]  ;;  %s1214_s21 = sld [smem:[#allocation13_spill]] }
 0x293   : > { %p631_p13 = scmp.ge.s32.totalorder %s871_s25, 2 }
 0x298   : > { %s465_s22 = sand.u32 1, %s1213_s9   ;;  %p1215_p3 = scmp.ne.s32.totalorder %s1214_s21, 0 }
 0x299   : > { %s466_s23 = scalar_lea.sflag [#allocation4], %s465_s22 }
 0x29a   : > { %p625_p7 = pnand %p631_p13, %p1215_p3 }
 0x29c   : > { %838 = dma.done.wait (!%p625_p7), %s466_s23, 128  }
 0x29d   : > { %840 = vsyncadd (!%p625_p7), %s466_s23, 4294967168  ;;  %s22_s25 = sadd.s32 1, %s871_s25   ;;  %s1216_s21 = sld [smem:[#allocation12_spill]] }
 0x29e   : > { %p19_p1 = scmp.ge.s32.totalorder %s22_s25, 6   ;;  %s1217_s23 = sld [smem:[#allocation14_spill]] }
 0x29f   : > { %s1218_s10 = sld [smem:[#allocation15_spill]]  ;;  %s1219_s18 = smov %s847_s19 }
 0x2a0   : > { %s1220_s19 = smov %s851_s20  ;;  %s1221_s20 = smov %s1036_s13 }
 0x2a1   : > { %s1222_s22 = smov %s867_s24  ;;  %21 = sbr.rel (!%p19_p1) target bundleno = 11 (0xb), region = 95 }
 0x2a5   : > { %s1223_s24 = smov %s1218_s10 }
 0x2a8   :  { %471 = vsyncpa [#allocation3], 1 }
 0x2a9   :  { %473 = vsyncpa [#allocation3 + $0x1], 1 }
 0x2aa   :  { %474 = vsyncpa [#allocation6], 1 }
 0x2ab   :  { %475 = vsyncpa [#allocation4], 1 }
 0x2ac   :  { %477 = vsyncpa [#allocation4 + $0x1], 1 }

</bundles_post_ra>
